<compile_context>
chip_gen: v7x
topology: tpu7x:2x2x1
jax: 0.10.0
libtpu: 0.0.40
codegen_flags: <defaults>
</compile_context>

<pallas_src>
import jax
import jax.numpy as jnp
from jax import lax
from jax.experimental import pallas as pl
from jax.experimental.pallas import tpu as pltpu

_TM_CAP = 1024          # max batch-tile rows
_SINGLE_TILE_MAX = 512  # up to this batch, use one full-extent tile


def _round_up(n, m):
    return ((n + m - 1) // m) * m


def _emotion_mlp_kernel(x_ref, w1_ref, b1_ref, w2_ref, b2_ref,
                        w3t_ref, b3t_ref, out_ref):
    # ---- Layer 1: Linear(in -> 128) + ReLU (f32 accumulation on MXU) ----
    h1 = jnp.dot(x_ref[...], w1_ref[...], preferred_element_type=jnp.float32)
    h1 = jnp.maximum(h1 + b1_ref[...], 0.0)                  # (tm, 128) f32
    # Dropout(0.3): identity in eval mode.

    # ---- Layer 2: Linear(128 -> 64) + ReLU ----
    h2 = jnp.dot(h1.astype(w2_ref.dtype), w2_ref[...],
                 preferred_element_type=jnp.float32)
    h2 = jnp.maximum(h2 + b2_ref[...], 0.0)                   # (tm, 64) f32
    # Dropout(0.3): identity in eval mode.

    # ---- Layer 3, transposed: logits^T[e, b] = sum_k w3t[e, k] * h2[b, k] ----
    logits_t = lax.dot_general(
        w3t_ref[...], h2.astype(w3t_ref.dtype),
        dimension_numbers=(((1,), (1,)), ((), ())),            # A @ B^T
        preferred_element_type=jnp.float32)
    logits_t = logits_t + b3t_ref[...]                         # (ne, tm) f32

    # ---- Softmax over the emotion (sublane) axis ----
    m = jnp.max(logits_t, axis=0, keepdims=True)               # (1, tm)
    e = jnp.exp(logits_t - m)
    denom = jnp.sum(e, axis=0, keepdims=True)
    inv = pl.reciprocal(denom, approx=True)                    # EUP slot
    inv = inv * (2.0 - denom * inv)                            # Newton refine
    out_ref[...] = (e * inv).astype(out_ref.dtype)             # lane-dense store


def _choose_tile(batch, block_m):
    if block_m is not None:
        if block_m >= batch:
            return batch                       # single full-extent tile
        if block_m % 128 != 0:
            raise ValueError("block_m must be a multiple of 128 or >= batch")
        return block_m
    if batch <= _SINGLE_TILE_MAX:
        return batch                           # full-extent tile, any B
    # Multiple of 128, >= 4 grid steps for v7x's two TensorCores, capped.
    return min(_TM_CAP, _round_up(pl.cdiv(batch, 4), 128))


def emotion_audio_classifier(x, params, *, block_m=None):
    """Forward pass. x: (B, input_size). Returns (B, num_emotions) float32.

    For the bf16 MXU fast path, pass bf16 x / weights directly (f32
    accumulation; biases and softmax stay f32). No pad/cast of x is done here.
    """
    w1, b1, w2, b2, w3, b3 = params
    batch, in_size = x.shape
    num_emotions = w3.shape[1]

    # Layer-3 params pre-transposed (tiny one-time op) for the compact
    # transposed-output path; biases forced to f32 in all paths.
    w3t = w3.T                                                  # (ne, 64)
    b3t = jnp.asarray(b3, jnp.float32).reshape(num_emotions, 1)
    b1 = jnp.asarray(b1, jnp.float32).reshape(1, -1)
    b2 = jnp.asarray(b2, jnp.float32).reshape(1, -1)

    tm = _choose_tile(batch, block_m)
    grid = (pl.cdiv(batch, tm),)

    def resident(arr):
        # Weights/biases: one full block, constant index_map -> stay in VMEM.
        return pl.BlockSpec(arr.shape, lambda i: (0, 0))

    out_t = pl.pallas_call(
        _emotion_mlp_kernel,
        out_shape=jax.ShapeDtypeStruct((num_emotions, batch), jnp.float32),
        grid_spec=pltpu.PrefetchScalarGridSpec(
            num_scalar_prefetch=0,
            grid=grid,
            in_specs=[
                pl.BlockSpec((tm, in_size), lambda i: (i, 0)),
                resident(w1), resident(b1),
                resident(w2), resident(b2),
                resident(w3t), resident(b3t),
            ],
            out_specs=pl.BlockSpec((num_emotions, tm), lambda i: (0, i)),
        ),
        compiler_params=pltpu.CompilerParams(
            dimension_semantics=("parallel",)),
    )(x, w1, b1, w2, b2, w3t, b3t)

    return out_t.T  # tiny (ne, B) -> (B, ne) transpose in the wrapper


def init_params(key, input_size=64, num_emotions=8):
    """Deterministic synthetic parameter init (PyTorch-like uniform ranges)."""
    ks = jax.random.split(key, 6)

    def linear(kw, kb, fan_in, fan_out):
        bound = 1.0 / jnp.sqrt(fan_in)
        w = jax.random.uniform(kw, (fan_in, fan_out), jnp.float32, -bound, bound)
        b = jax.random.uniform(kb, (1, fan_out), jnp.float32, -bound, bound)
        return w, b

    w1, b1 = linear(ks[0], ks[1], input_size, 128)
    w2, b2 = linear(ks[2], ks[3], 128, 64)
    w3, b3 = linear(ks[4], ks[5], 64, num_emotions)
    return (w1, b1, w2, b2, w3, b3)


def _reference_forward(x, params):
    """Pure-JAX reference for correctness check."""
    w1, b1, w2, b2, w3, b3 = params
    h1 = jnp.maximum(x @ w1 + b1, 0.0)
    h2 = jnp.maximum(h1 @ w2 + b2, 0.0)
    logits = h2 @ w3 + b3
    return jax.nn.softmax(logits, axis=1)


if __name__ == "__main__":
    key = jax.random.PRNGKey(0)
    k_p, k1, k2, k3, k4 = jax.random.split(key, 5)

    input_size, num_emotions = 64, 8
    params = init_params(k_p, input_size=input_size, num_emotions=num_emotions)

    # Case 1: small batch, single full-extent tile (typical module usage).
    x1 = jax.random.normal(k1, (8, input_size), dtype=jnp.float32)
    out1 = jax.block_until_ready(emotion_audio_classifier(x1, params))
    ref1 = _reference_forward(x1, params)
    assert out1.shape == (8, num_emotions)
    assert jnp.allclose(out1, ref1, atol=2e-5, rtol=2e-5), "mismatch (case 1)"
    assert jnp.allclose(jnp.sum(out1, axis=1), 1.0, atol=1e-5)

    # Case 2: ragged small batch (13 rows) -> full-extent block, no padding.
    x2 = jax.random.normal(k2, (13, input_size), dtype=jnp.float32)
    out2 = jax.block_until_ready(emotion_audio_classifier(x2, params))
    ref2 = _reference_forward(x2, params)
    assert out2.shape == (13, num_emotions)
    assert jnp.allclose(out2, ref2, atol=2e-5, rtol=2e-5), "mismatch (case 2)"
    assert jnp.allclose(jnp.sum(out2, axis=1), 1.0, atol=1e-5)

    # Case 3: multi-step grid with a ragged last block (300 rows, tm=128):
    # exercises batch tiling, resident weights across steps, OOB handling.
    x3 = jax.random.normal(k3, (300, input_size), dtype=jnp.float32)
    out3 = jax.block_until_ready(
        emotion_audio_classifier(x3, params, block_m=128))
    ref3 = _reference_forward(x3, params)
    assert out3.shape == (300, num_emotions)
    assert jnp.allclose(out3, ref3, atol=2e-5, rtol=2e-5), "mismatch (case 3)"
    assert jnp.allclose(jnp.sum(out3, axis=1), 1.0, atol=1e-5)

    # Case 4: bf16 MXU-input fast path -- caller supplies bf16 x / weights
    # (f32 accumulation, f32 biases & softmax). Looser tolerance from bf16.
    x4 = jax.random.normal(k4, (32, input_size), dtype=jnp.float32)
    w1, b1, w2, b2, w3, b3 = params
    params_bf16 = (w1.astype(jnp.bfloat16), b1,
                   w2.astype(jnp.bfloat16), b2,
                   w3.astype(jnp.bfloat16), b3)
    out4 = jax.block_until_ready(
        emotion_audio_classifier(x4.astype(jnp.bfloat16), params_bf16))
    ref4 = _reference_forward(x4, params)
    assert out4.shape == (32, num_emotions)
    assert jnp.allclose(out4, ref4, atol=3e-2, rtol=3e-2), "mismatch (bf16)"

    print("KERNEL_OK")
</pallas_src>

<mosaic_0001>
module attributes {stable_mosaic.version = 11 : i64} {
  func.func @_emotion_mlp_kernel(%arg0: i32, %arg1: memref<8x64xf32, #tpu.memory_space<vmem>>, %arg2: memref<64x128xf32, #tpu.memory_space<vmem>>, %arg3: memref<1x128xf32, #tpu.memory_space<vmem>>, %arg4: memref<128x64xf32, #tpu.memory_space<vmem>>, %arg5: memref<1x64xf32, #tpu.memory_space<vmem>>, %arg6: memref<8x64xf32, #tpu.memory_space<vmem>>, %arg7: memref<8x1xf32, #tpu.memory_space<vmem>>, %arg8: memref<8x8xf32, #tpu.memory_space<vmem>>) attributes {dimension_semantics = [#tpu.dimension_semantics<parallel>], iteration_bounds = array<i64: 1>, scalar_prefetch = 0 : i64, scratch_operands = 0 : i64, tpu.core_type = #tpu.core_type<tc>, window_params = [{transform_indices = @transform_0, window_bounds = array<i64: 8, 64>}, {pipeline_mode = #tpu.pipeline_mode<synchronous>, transform_indices = @transform_1, window_bounds = array<i64: 64, 128>}, {pipeline_mode = #tpu.pipeline_mode<synchronous>, transform_indices = @transform_2, window_bounds = array<i64: 1, 128>}, {pipeline_mode = #tpu.pipeline_mode<synchronous>, transform_indices = @transform_3, window_bounds = array<i64: 128, 64>}, {pipeline_mode = #tpu.pipeline_mode<synchronous>, transform_indices = @transform_4, window_bounds = array<i64: 1, 64>}, {pipeline_mode = #tpu.pipeline_mode<synchronous>, transform_indices = @transform_5, window_bounds = array<i64: 8, 64>}, {pipeline_mode = #tpu.pipeline_mode<synchronous>, transform_indices = @transform_6, window_bounds = array<i64: 8, 1>}, {transform_indices = @transform_7, window_bounds = array<i64: 8, 8>}]} {
    %c0 = arith.constant 0 : index
    %c0_0 = arith.constant 0 : index
    %0 = vector.load %arg1[%c0, %c0_0] : memref<8x64xf32, #tpu.memory_space<vmem>>, vector<8x64xf32>
    %c0_1 = arith.constant 0 : index
    %c0_2 = arith.constant 0 : index
    %1 = vector.load %arg2[%c0_1, %c0_2] : memref<64x128xf32, #tpu.memory_space<vmem>>, vector<64x128xf32>
    %cst = arith.constant dense<0.000000e+00> : vector<8x128xf32>
    %2 = tpu.matmul %0, %1, %cst {dimension_numbers = #tpu.dot_dimension_numbers<[1], [0], [0], [1], [0, 0, 1, 1], [], []>} : vector<8x64xf32>, vector<64x128xf32>, vector<8x128xf32> -> vector<8x128xf32>
    %c0_3 = arith.constant 0 : index
    %c0_4 = arith.constant 0 : index
    %3 = vector.load %arg3[%c0_3, %c0_4] : memref<1x128xf32, #tpu.memory_space<vmem>>, vector<1x128xf32>
    %4 = vector.broadcast %3 : vector<1x128xf32> to vector<8x128xf32>
    %5 = arith.addf %2, %4 : vector<8x128xf32>
    %cst_5 = arith.constant 0.000000e+00 : f32
    %6 = vector.broadcast %cst_5 : f32 to vector<8x128xf32>
    %7 = arith.maximumf %5, %6 : vector<8x128xf32>
    %c0_6 = arith.constant 0 : index
    %c0_7 = arith.constant 0 : index
    %8 = vector.load %arg4[%c0_6, %c0_7] : memref<128x64xf32, #tpu.memory_space<vmem>>, vector<128x64xf32>
    %cst_8 = arith.constant dense<0.000000e+00> : vector<8x64xf32>
    %9 = tpu.matmul %7, %8, %cst_8 {dimension_numbers = #tpu.dot_dimension_numbers<[1], [0], [0], [1], [0, 0, 1, 1], [], []>} : vector<8x128xf32>, vector<128x64xf32>, vector<8x64xf32> -> vector<8x64xf32>
    %c0_9 = arith.constant 0 : index
    %c0_10 = arith.constant 0 : index
    %10 = vector.load %arg5[%c0_9, %c0_10] : memref<1x64xf32, #tpu.memory_space<vmem>>, vector<1x64xf32>
    %11 = vector.broadcast %10 : vector<1x64xf32> to vector<8x64xf32>
    %12 = arith.addf %9, %11 : vector<8x64xf32>
    %cst_11 = arith.constant 0.000000e+00 : f32
    %13 = vector.broadcast %cst_11 : f32 to vector<8x64xf32>
    %14 = arith.maximumf %12, %13 : vector<8x64xf32>
    %c0_12 = arith.constant 0 : index
    %c0_13 = arith.constant 0 : index
    %15 = vector.load %arg6[%c0_12, %c0_13] : memref<8x64xf32, #tpu.memory_space<vmem>>, vector<8x64xf32>
    %cst_14 = arith.constant dense<0.000000e+00> : vector<8x8xf32>
    %16 = tpu.matmul %15, %14, %cst_14 {dimension_numbers = #tpu.dot_dimension_numbers<[1], [1], [0], [0], [0, 0, 1, 0], [], []>} : vector<8x64xf32>, vector<8x64xf32>, vector<8x8xf32> -> vector<8x8xf32>
    %c0_15 = arith.constant 0 : index
    %c0_16 = arith.constant 0 : index
    %17 = vector.load %arg7[%c0_15, %c0_16] : memref<8x1xf32, #tpu.memory_space<vmem>>, vector<8x1xf32>
    %18 = vector.broadcast %17 : vector<8x1xf32> to vector<8x8xf32>
    %19 = arith.addf %16, %18 : vector<8x8xf32>
    %cst_17 = arith.constant dense<0xFF800000> : vector<8xf32>
    %20 = vector.multi_reduction <maximumf>, %19, %cst_17 [0] : vector<8x8xf32> to vector<8xf32>
    %21 = vector.shape_cast %20 : vector<8xf32> to vector<1x8xf32>
    %22 = vector.broadcast %21 : vector<1x8xf32> to vector<8x8xf32>
    %23 = arith.subf %19, %22 : vector<8x8xf32>
    %24 = math.exp %23 : vector<8x8xf32>
    %cst_18 = arith.constant dense<0.000000e+00> : vector<8xf32>
    %25 = vector.multi_reduction <add>, %24, %cst_18 [0] : vector<8x8xf32> to vector<8xf32>
    %26 = vector.shape_cast %25 : vector<8xf32> to vector<1x8xf32>
    %27 = tpu.reciprocal %26 {approx = true} : vector<1x8xf32> -> vector<1x8xf32>
    %28 = arith.mulf %26, %27 : vector<1x8xf32>
    %cst_19 = arith.constant 2.000000e+00 : f32
    %29 = vector.broadcast %cst_19 : f32 to vector<1x8xf32>
    %30 = arith.subf %29, %28 : vector<1x8xf32>
    %31 = arith.mulf %27, %30 : vector<1x8xf32>
    %32 = vector.broadcast %31 : vector<1x8xf32> to vector<8x8xf32>
    %33 = arith.mulf %24, %32 : vector<8x8xf32>
    %c0_20 = arith.constant 0 : index
    %c0_21 = arith.constant 0 : index
    %34 = vector.load %arg8[%c0_20, %c0_21] : memref<8x8xf32, #tpu.memory_space<vmem>>, vector<8x8xf32>
    tpu.vector_store %arg8[%c0_20, %c0_21], %33 {strides = array<i32>} : memref<8x8xf32, #tpu.memory_space<vmem>>, vector<8x8xf32>,
    return
  }
  func.func @transform_0(%arg0: i32) -> (i32, i32) {
    %c0_i32 = arith.constant 0 : i32
    %c0_i32_0 = arith.constant 0 : i32
    return %arg0, %c0_i32 : i32, i32
  }
  func.func @transform_1(%arg0: i32) -> (i32, i32) {
    %c0_i32 = arith.constant 0 : i32
    %c0_i32_0 = arith.constant 0 : i32
    %c0_i32_1 = arith.constant 0 : i32
    return %c0_i32, %c0_i32_0 : i32, i32
  }
  func.func @transform_2(%arg0: i32) -> (i32, i32) {
    %c0_i32 = arith.constant 0 : i32
    %c0_i32_0 = arith.constant 0 : i32
    %c0_i32_1 = arith.constant 0 : i32
    return %c0_i32, %c0_i32_0 : i32, i32
  }
  func.func @transform_3(%arg0: i32) -> (i32, i32) {
    %c0_i32 = arith.constant 0 : i32
    %c0_i32_0 = arith.constant 0 : i32
    %c0_i32_1 = arith.constant 0 : i32
    return %c0_i32, %c0_i32_0 : i32, i32
  }
  func.func @transform_4(%arg0: i32) -> (i32, i32) {
    %c0_i32 = arith.constant 0 : i32
    %c0_i32_0 = arith.constant 0 : i32
    %c0_i32_1 = arith.constant 0 : i32
    return %c0_i32, %c0_i32_0 : i32, i32
  }
  func.func @transform_5(%arg0: i32) -> (i32, i32) {
    %c0_i32 = arith.constant 0 : i32
    %c0_i32_0 = arith.constant 0 : i32
    %c0_i32_1 = arith.constant 0 : i32
    return %c0_i32, %c0_i32_0 : i32, i32
  }
  func.func @transform_6(%arg0: i32) -> (i32, i32) {
    %c0_i32 = arith.constant 0 : i32
    %c0_i32_0 = arith.constant 0 : i32
    %c0_i32_1 = arith.constant 0 : i32
    return %c0_i32, %c0_i32_0 : i32, i32
  }
  func.func @transform_7(%arg0: i32) -> (i32, i32) {
    %c0_i32 = arith.constant 0 : i32
    %c0_i32_0 = arith.constant 0 : i32
    return %c0_i32, %arg0 : i32, i32
  }
}

</mosaic_0001>

<bundles_post_ra>
// kernel: tpu_custom_call.1
= control target key start
LH: loop header
LB: loop body
LE: loop exit
PB: predicated region body
PF: predicated region fallthrough
CT: control target
= control target key end

     0   :  { %v495_v3 = vmov 0.0|0.0   ;;  %vm496_vm0 = vmmov 0   ;;  %v497_v6 = vmov 0.0   ;;  %s648_s0 = inlined_call_operand.vmem [shape: f32[8,64], index: 0, kind: input, shape index: {}]   ;;  %s649_s1 = inlined_call_operand.vmem [shape: f32[64,128], index: 1, kind: input, shape index: {}]   ;;  %s650_s2 = inlined_call_operand.vmem [shape: f32[1,128], index: 2, kind: input, shape index: {}]   ;;  %s651_s3 = inlined_call_operand.vmem [shape: f32[128,64], index: 3, kind: input, shape index: {}]   ;;  %s652_s4 = inlined_call_operand.vmem [shape: f32[1,64], index: 4, kind: input, shape index: {}]   ;;  %s653_s5 = inlined_call_operand.vmem [shape: f32[8,64], index: 5, kind: input, shape index: {}]   ;;  %s654_s6 = inlined_call_operand.vmem [shape: f32[8,1], index: 6, kind: input, shape index: {}]   ;;  %s655_s7 = inlined_call_operand.hbm [shape: f32[8,8], index: 7, kind: output, shape index: {}]  }
   0x1   :  { %v28_v0 = vld [vmem:[%s649_s1] sm:$0xff]  ;;  %v29_v1 = vld [vmem:[%s649_s1 + $0x8] sm:$0xff]  ;;  %v30_v2 = vld [vmem:[%s649_s1 + $0x10] sm:$0xff]  ;;  %425 = vmatprep.subr.bf16.mxu0 %v495_v3  ;;  %382 = vmatprep.mubr.msk.f32.mxu0 %vm496_vm0, %v497_v6 }
   0x2   :  { %v426_v4 = vpack.c.bf16 %v29_v1, %v28_v0  ;;  %v31_v5 = vld [vmem:[%s649_s1 + $0x18] sm:$0xff]  ;;  %437 = vmatprep.subr.bf16.mxu1 %v495_v3  ;;  %417 = vmatprep.mubr.msk.f32.mxu1 %vm496_vm0, %v497_v6  ;;  %v118_v8 = vld [vmem:[%s651_s3] sm:$0xff]  ;;  %v119_v9 = vld [vmem:[%s651_s3 + $0x8] sm:$0xff] }
   0x3   :  { %v429_v7 = vpack.c.bf16 %v31_v5, %v30_v2  ;;  %v120_v10 = vld [vmem:[%s651_s3 + $0x10] sm:$0xff]  ;;  %v32_v11 = vld [vmem:[%s649_s1 + $0x20] sm:$0xff]  ;;  %v33_v12 = vld [vmem:[%s649_s1 + $0x28] sm:$0xff]  ;;  %v438_v13 = vpack.c.bf16 %v119_v9, %v118_v8 }
   0x4   :  { %427 = vmatpush3.bf16.msra.mxu0 %v426_v4  ;;  %v121_v14 = vld [vmem:[%s651_s3 + $0x18] sm:$0xff]  ;;  %v432_v16 = vpack.c.bf16 %v33_v12, %v32_v11  ;;  %v122_v17 = vld [vmem:[%s651_s3 + $0x20] sm:$0xff]  ;;  %v123_v18 = vld [vmem:[%s651_s3 + $0x28] sm:$0xff] }
   0x5   :  { %428 = vmatprep.subr.bf16.mxu0 %v495_v3  ;;  %439 = vmatpush3.bf16.msra.mxu1 %v438_v13  ;;  %v441_v15 = vpack.c.bf16 %v121_v14, %v120_v10  ;;  %v34_v19 = vld [vmem:[%s649_s1 + $0x30] sm:$0xff]  ;;  %v35_v20 = vld [vmem:[%s649_s1 + $0x38] sm:$0xff] }
   0x6   :  { %440 = vmatprep.subr.bf16.mxu1 %v495_v3 }
   0x8   :  { %430 = vmatpush3.bf16.msra.mxu0 %v429_v7 }
   0x9   :  { %431 = vmatprep.subr.bf16.mxu0 %v495_v3 }
   0xa   :  { %12 = vsyncpa [#allocation3], 0  ;;  %442 = vmatpush3.bf16.msra.mxu1 %v441_v15  ;;  %v444_v21 = vpack.c.bf16 %v123_v18, %v122_v17  ;;  %v435_v22 = vpack.c.bf16 %v35_v20, %v34_v19  ;;  %v124_v23 = vld [vmem:[%s651_s3 + $0x30] sm:$0xff]  ;;  %v125_v24 = vld [vmem:[%s651_s3 + $0x38] sm:$0xff]  ;;  %vm43_vm1 = vcmask 523264   ;;  %v498_v45 = vmov 0  }
   0xb   :  { %443 = vmatprep.subr.bf16.mxu1 %v495_v3  ;;  %v447_v25 = vpack.c.bf16 %v125_v24, %v124_v23  ;;  %v27_v26 = vld [vmem:[%s648_s0] sm:$0xff]  ;;  %v127_v28 = vld [vmem:[%s651_s3 + $0x48] sm:$0xff]  ;;  %v128_v30 = vld [vmem:[%s651_s3 + $0x50] sm:$0xff]  ;;  %466 = vset.pattern.permute.xlu0 %v498_v45  ;;  %vm295_vm2 = vcmask 64512  }
   0xc   :  { %433 = vmatpush3.bf16.msra.mxu0 %v432_v16  ;;  %v126_v27 = vld [vmem:[%s651_s3 + $0x40] sm:$0xff]  ;;  %v129_v31 = vld [vmem:[%s651_s3 + $0x58] sm:$0xff]  ;;  %v131_v34 = vld [vmem:[%s651_s3 + $0x68] sm:$0xff] }
   0xd   :  { %434 = vmatprep.subr.bf16.mxu0 %v495_v3  ;;  %v450_v29 = vpack.c.bf16 %v127_v28, %v126_v27  ;;  %v453_v32 = vpack.c.bf16 %v129_v31, %v128_v30  ;;  %v130_v33 = vld [vmem:[%s651_s3 + $0x60] sm:$0xff]  ;;  %v132_v36 = vld [vmem:[%s651_s3 + $0x70] sm:$0xff]  ;;  %v133_v37 = vld [vmem:[%s651_s3 + $0x78] sm:$0xff] }
   0xe   :  { %445 = vmatpush3.bf16.msra.mxu1 %v444_v21  ;;  %v456_v35 = vpack.c.bf16 %v131_v34, %v130_v33  ;;  %v459_v38 = vpack.c.bf16 %v133_v37, %v132_v36  ;;  %v333_v39 = vld [vmem:[%s650_s2] ss:$0 sm:$0xff] }
   0xf   :  { %446 = vmatprep.subr.bf16.mxu1 %v495_v3  ;;  %v213_v44 = vld [vmem:[%s654_s6] sm:$0xff] }
  0x10   :  { %436 = vmatpush3.bf16.msra.mxu0 %v435_v22  ;;  %216 = vperm.xlu0 %466, %v213_v44   ;;  %v335_v46 = vld [vmem:[%s652_s4] ss:$0 sm:$0xff]  ;;  %s499_s4 = smov [#allocation2]  }
  0x11   :  { %420 = vmatprep.subr.mxu0 %v497_v6  ;;  %v212_v51 = vld [vmem:[%s653_s5] sm:$0xff]  ;;  %s325_s5 = sshll.u32 %s499_s4, 4  ;;  %s326_s5 = int_to_ptr.vmem [resolvable:$true] %s325_s5 }
  0x12   :  { %448 = vmatpush3.bf16.msra.mxu1 %v447_v25  ;;  %s471_s6 = scalar_lea.vmem %s326_s5, 128  ;;  %p476_p1 = scmp.lt.s32.totalorder %s326_s5, %s326_s5 }
  0x13   :  { %383 = vmatmul.mubr.msk.f32.vlgmr.msra.gmra.mrb[0].mxu0 %vm43_vm1, %v27_v26  ;;  %449 = vmatprep.subr.bf16.mxu1 %v495_v3  ;;  %p472_p0 = scmp.ne.s32.totalorder %s326_s5, %s471_s6  ;;  %p477_p2 = scmp.lt.s32.totalorder %s471_s6, %s471_s6 }
  0x14   :  { %422 = vmatprep.mubr.msk.f32.mxu0 %vm496_vm0, %v497_v6 }
  0x15   :  { %p478_p3 = por %p477_p2, %p476_p1 }
  0x16   :  { %451 = vmatpush3.bf16.msra.mxu1 %v450_v29 }
  0x17   :  { %452 = vmatprep.subr.bf16.mxu1 %v495_v3  ;;  %p479_p4 = pnand %p478_p3, %p472_p0 }
  0x1a   :  { %454 = vmatpush3.bf16.msra.mxu1 %v453_v32 }
  0x1b   :  { %455 = vmatprep.subr.bf16.mxu1 %v495_v3 }
  0x1e   :  { %457 = vmatpush3.bf16.msra.mxu1 %v456_v35 }
  0x1f   :  { %458 = vmatprep.subr.bf16.mxu1 %v495_v3 }
  0x22   :  { %460 = vmatpush3.bf16.msra.mxu1 %v459_v38 }
  0x8f   :  { %v217_v52 = vpop.permute.xlu0 %216 }
  0xe6   :  { %v113_v40 = vpop.f32.mrb[0].mxu0 }
  0xe7   :  { %v114_v41 = vadd.f32 %v333_v39, %v113_v40  ;;  %v384_v42 = vpop.f32.mrb[1].mxu0 }
  0xe9   :  { %v117_v43 = vmax.f32 %v114_v41, 0.0 }
  0xeb   :  { %418 = vmatmul.mubr.f32.vlgmr.msra.gmra.mrb[0].mxu1 %v117_v43 }
 0x1be   :  { %v207_v47 = vpop.f32.mrb[0].mxu1 }
 0x1bf   :  { %v208_v48 = vadd.f32 %v335_v46, %v207_v47  ;;  %v419_v49 = vpop.f32.mrb[1].mxu1 }
 0x1c1   :  { %v211_v50 = vmax.f32 %v208_v48, 0.0 }
 0x1c3   :  { %421 = vmatpush3.xpose.msk.msra.mxu0 %vm43_vm1, %v211_v50 }
 0x1c6   :  { %423 = vmatmul.mubr.msk.f32.vlgmr.msra.gmra.mrb[2].mxu0 %vm43_vm1, %v212_v51 }
 0x299   :  { %v291_v53 = vpop.f32.mrb[2].mxu0 }
 0x29a   :  { %v292_v54 = vadd.f32 %v291_v53, %v217_v52  ;;  %v424_v55 = vpop.f32.mrb[3].mxu0 }
 0x29c   :  { %v296_v56 = vsel %vm295_vm2, %v292_v54, -inf }
 0x29d   :  { %v297_v57 = vrot.slane %v296_v56, 4 }
 0x29f   :  { %v298_v58 = vmax.f32 %v296_v56, %v297_v57 }
 0x2a1   :  { %v299_v59 = vrot.slane %v298_v58, 2 }
 0x2a3   :  { %v300_v60 = vmax.f32 %v298_v58, %v299_v59 }
 0x2a5   :  { %v301_v61 = vrot.slane %v300_v60, 1 }
 0x2a7   :  { %v302_v62 = vmax.f32 %v300_v60, %v301_v61 }
 0x2a9   :  { %v303_v63 = vsub.f32 %v292_v54, %v302_v62 }
 0x2ab   :  { %v304_v0 = vmul.f32 1.442695, %v303_v63 }
 0x2ad   :  { %467 = vpow2.f32 %v304_v0 }
 0x2b7   :  { %v468_v1 = vpop.eup %467 }
 0x2b8   :  { %v306_v2 = vsel %vm295_vm2, %v468_v1, 0.0 }
 0x2b9   :  { %v307_v3 = vrot.slane %v306_v2, 4 }
 0x2bb   :  { %v308_v4 = vadd.f32 %v307_v3, %v306_v2 }
 0x2bd   :  { %v309_v5 = vrot.slane %v308_v4, 2 }
 0x2bf   :  { %v310_v6 = vadd.f32 %v309_v5, %v308_v4 }
 0x2c1   :  { %v311_v7 = vrot.slane %v310_v6, 1 }
 0x2c3   :  { %v312_v8 = vadd.f32 %v311_v7, %v310_v6 }
 0x2c5   :  { %469 = vrcp.f32 %v312_v8 }
 0x2cf   :  { %v470_v9 = vpop.eup %469 }
 0x2d0   :  { %v314_v10 = vmul.f32 %v470_v9, %v312_v8 }
 0x2d2   :  { %v315_v11 = vsub.f32 2.0, %v314_v10 }
 0x2d4   :  { %v316_v12 = vmul.f32 %v470_v9, %v315_v11 }
 0x2d6   :  { %v317_v13 = vmul.f32 %v468_v1, %v316_v12 }
 0x2d8   :  { %318 = vst.msk [vmem:[#allocation2] sm:$0xff] %vm295_vm2, %v317_v13 }
 0x2d9   :  { %482 = shalt.err (!%p479_p4)
}
 0x2da   :  { %s483_s1 = scalar_lea.hbm %s655_s7, 128 }
 0x2db   :  { %p484_p5 = scmp.ne.s32.totalorder %s655_s7, %s483_s1  ;;  %p487_p6 = scmp.lt.u32.totalorder %s483_s1, %s655_s7 }
 0x2dd   :  { %p489_p7 = pnand %p487_p6, %p484_p5 }
 0x2df   :  { %492 = shalt.err (!%p489_p7)
}
 0x2e0   :  { %328 = dma.vmem_to_hbm [thread:$0]  %s326_s5, 128, %s655_s7, [#allocation3]  }
 0x2e1   :  { %493 = dma.done.wait [#allocation3], 128  }
 0x2e2   :  { %494 = vsyncadd [#allocation3], 4294967168 }
 0x2e3   :  { %332 = vsyncpa [#allocation3], 1 }

</bundles_post_ra>
